<compile_context>
chip_gen: v5e
topology: v5e:2x2
jax: 0.10.0
libtpu: 0.0.40
codegen_flags: <defaults>
</compile_context>

<pallas_src>
import jax
import jax.numpy as jnp
from jax.experimental import pallas as pl
from jax.experimental.pallas import tpu as pltpu


# ---------------------------------------------------------------------------
# helpers
# ---------------------------------------------------------------------------

def _cdiv(a, b):
    return (a + b - 1) // b


def _round_up(x, m):
    return _cdiv(x, m) * m


def _pick_row_tile(m, tm_max):
    """Row tile (multiple of 8, <= tm_max), padded row count, and grid size."""
    tm_max = max(8, _round_up(tm_max, 8))
    n_tiles = _cdiv(m, tm_max)
    tm = _round_up(_cdiv(m, n_tiles), 8)
    return tm, tm * n_tiles, n_tiles


# ---------------------------------------------------------------------------
# kernels
# ---------------------------------------------------------------------------

def _affine_kernel(x_ref, w_ref, b_ref, o_ref):
    # o = x @ w + b ; one (tm, K) row tile per grid step, w/b resident in VMEM.
    acc = jnp.dot(x_ref[...], w_ref[...], preferred_element_type=jnp.float32)
    o_ref[...] = (acc + b_ref[...]).astype(o_ref.dtype)


def _mlp_head_kernel(x_ref, w1_ref, b1_ref, w2_ref, b2_ref, o_ref):
    # dense -> exact (erf) gelu -> out_proj, fused on one (tm, .) row tile.
    h = jnp.dot(x_ref[...], w1_ref[...], preferred_element_type=jnp.float32)
    h = jax.nn.gelu(h + b1_ref[...], approximate=False)
    y = jnp.dot(h.astype(w2_ref.dtype), w2_ref[...],
                preferred_element_type=jnp.float32) + b2_ref[...]
    o_ref[...] = y.astype(o_ref.dtype)


def _lstm_step_kernel(xg_ref, whh_ref, o_ref, h_scr, c_scr):
    # One LSTM time step.  xg_ref holds the precomputed x_t @ W_ih^T + bias for
    # this step; (h, c) live in VMEM scratch and persist across the time grid.
    hidden = h_scr.shape[-1]

    @pl.when(pl.program_id(0) == 0)
    def _():
        h_scr[...] = jnp.zeros_like(h_scr)
        c_scr[...] = jnp.zeros_like(c_scr)

    h_prev = h_scr[...]
    gates = xg_ref[0].astype(jnp.float32) + jnp.dot(
        h_prev, whh_ref[...], preferred_element_type=jnp.float32)
    i = jax.nn.sigmoid(gates[:, 0 * hidden:1 * hidden])
    f = jax.nn.sigmoid(gates[:, 1 * hidden:2 * hidden])
    g = jnp.tanh(gates[:, 2 * hidden:3 * hidden])
    o = jax.nn.sigmoid(gates[:, 3 * hidden:4 * hidden])
    c = f * c_scr[...] + i * g
    h = o * jnp.tanh(c)
    h_scr[...] = h
    c_scr[...] = c
    o_ref[0] = h.astype(o_ref.dtype)


# ---------------------------------------------------------------------------
# pallas_call wrappers
# ---------------------------------------------------------------------------

def _affine(x2d, w, b, *, tm_max=512, matmul_dtype=None, out_dtype=None):
    """Row-tiled (M, K) @ (K, N) + b -> (M, N)."""
    out_dtype = out_dtype if out_dtype is not None else x2d.dtype
    if matmul_dtype is not None:
        x2d = x2d.astype(matmul_dtype)
        w = w.astype(matmul_dtype)
    m, k = x2d.shape
    n = w.shape[1]
    tm, m_pad, n_tiles = _pick_row_tile(m, tm_max)
    if m_pad != m:
        x2d = jnp.pad(x2d, ((0, m_pad - m), (0, 0)))
    out = pl.pallas_call(
        _affine_kernel,
        out_shape=jax.ShapeDtypeStruct((m_pad, n), out_dtype),
        grid_spec=pltpu.PrefetchScalarGridSpec(
            num_scalar_prefetch=0,
            grid=(n_tiles,),
            in_specs=[
                pl.BlockSpec((tm, k), lambda i: (i, 0)),   # row tile of frames
                pl.BlockSpec((k, n), lambda i: (0, 0)),    # resident weight
                pl.BlockSpec((1, n), lambda i: (0, 0)),    # resident bias (f32)
            ],
            out_specs=pl.BlockSpec((tm, n), lambda i: (i, 0)),
        ),
        compiler_params=pltpu.CompilerParams(
            dimension_semantics=("parallel",)),
    )(x2d, w, b.reshape(1, n).astype(jnp.float32))
    return out[:m]


def _mlp_head(x2d, w1, b1, w2, b2, *, tm_max=512, matmul_dtype=None,
              out_dtype=None):
    """Fused dense + gelu + out_proj over B*T frames, row-tiled."""
    out_dtype = out_dtype if out_dtype is not None else x2d.dtype
    if matmul_dtype is not None:
        x2d = x2d.astype(matmul_dtype)
        w1 = w1.astype(matmul_dtype)
        w2 = w2.astype(matmul_dtype)
    m, d_in = x2d.shape
    d_h = w1.shape[1]
    n = w2.shape[1]
    tm, m_pad, n_tiles = _pick_row_tile(m, tm_max)
    if m_pad != m:
        x2d = jnp.pad(x2d, ((0, m_pad - m), (0, 0)))
    out = pl.pallas_call(
        _mlp_head_kernel,
        out_shape=jax.ShapeDtypeStruct((m_pad, n), out_dtype),
        grid_spec=pltpu.PrefetchScalarGridSpec(
            num_scalar_prefetch=0,
            grid=(n_tiles,),
            in_specs=[
                pl.BlockSpec((tm, d_in), lambda i: (i, 0)),   # frame rows
                pl.BlockSpec((d_in, d_h), lambda i: (0, 0)),  # dense weight
                pl.BlockSpec((1, d_h), lambda i: (0, 0)),     # dense bias
                pl.BlockSpec((d_h, n), lambda i: (0, 0)),     # out_proj weight
                pl.BlockSpec((1, n), lambda i: (0, 0)),       # out_proj bias
            ],
            out_specs=pl.BlockSpec((tm, n), lambda i: (i, 0)),
        ),
        compiler_params=pltpu.CompilerParams(
            dimension_semantics=("parallel",)),
    )(x2d, w1, b1.reshape(1, d_h).astype(jnp.float32),
      w2, b2.reshape(1, n).astype(jnp.float32))
    return out[:m]


def _lstm_recurrence(xg, whh_t, hidden):
    """Sequential LSTM recurrence over the time grid.

    xg:    (T, B, 4H) precomputed x_t @ W_ih^T + (b_ih + b_hh), float32.
    whh_t: (H, 4H)    recurrent weight (transposed), gate order [i, f, g, o].
    Returns hidden states h_t of shape (T, B, H), float32.
    """
    t_len, b_sz, g = xg.shape
    return pl.pallas_call(
        _lstm_step_kernel,
        out_shape=jax.ShapeDtypeStruct((t_len, b_sz, hidden), jnp.float32),
        grid_spec=pltpu.PrefetchScalarGridSpec(
            num_scalar_prefetch=0,
            grid=(t_len,),
            in_specs=[
                pl.BlockSpec((1, b_sz, g), lambda t: (t, 0, 0)),  # step's xg
                pl.BlockSpec((hidden, g), lambda t: (0, 0)),      # resident W_hh^T
            ],
            out_specs=pl.BlockSpec((1, b_sz, hidden), lambda t: (t, 0, 0)),
            scratch_shapes=[
                pltpu.VMEM((b_sz, hidden), jnp.float32),   # h carry
                pltpu.VMEM((b_sz, hidden), jnp.float32),   # c carry
            ],
        ),
        compiler_params=pltpu.CompilerParams(
            dimension_semantics=("arbitrary",)),   # recurrence is sequential
    )(xg.astype(jnp.float32), whh_t.astype(jnp.float32))


# ---------------------------------------------------------------------------
# full module forward
# ---------------------------------------------------------------------------

def wav2vec2_audioframe_class_lstm_head(features, padding_mask, lstm_params,
                                        hidden_size, w1, b1, w2, b2, *,
                                        bidirectional=False, tm_max=512,
                                        matmul_dtype=None):
    """Forward pass of Wav2vec2AudioFrameClassLSTMHead (inference).

    features:    (B, T, input_dim)
    lstm_params: list over layers of (fwd, bwd); each direction is a tuple
                 (w_ih_T (Din, 4H), w_hh_T (H, 4H), bias (4H,)) with
                 bias = b_ih + b_hh and PyTorch gate order [i, f, g, o];
                 bwd is None for unidirectional layers.
    w1, b1:      dense Linear(hidden -> inner_dim), or (None, None) if inner_dim == 0.
    w2, b2:      out_proj Linear(-> num_outs).
    Returns (B, T, num_outs).
    """
    if padding_mask is not None:
        # TODO(synk): pack_padded_sequence semantics for variable-length
        # sequences (non-None padding_mask) are not implemented; only the
        # all-frames-valid path of the reference module is supported.
        raise NotImplementedError("only padding_mask=None is supported")

    b_sz, t_len, _ = features.shape
    # dropout_input / dropout_in: identity at inference.
    x = jnp.transpose(features, (1, 0, 2)).astype(jnp.float32)   # (T, B, Din)

    for fwd, bwd in lstm_params:
        d_in = x.shape[-1]
        x2d = x.reshape(t_len * b_sz, d_in)

        w_ih_t, w_hh_t, bias = fwd
        # Hoist the input projection out of the recurrence: one big row-tiled
        # matmul over all B*T frames keeps the MXU filled.
        xg = _affine(x2d, w_ih_t, bias, tm_max=tm_max,
                     matmul_dtype=matmul_dtype, out_dtype=jnp.float32)
        xg = xg.reshape(t_len, b_sz, 4 * hidden_size)
        hs = _lstm_recurrence(xg, w_hh_t, hidden_size)

        if bidirectional:
            w_ih_tb, w_hh_tb, bias_b = bwd
            xgb = _affine(x2d, w_ih_tb, bias_b, tm_max=tm_max,
                          matmul_dtype=matmul_dtype, out_dtype=jnp.float32)
            xgb = xgb.reshape(t_len, b_sz, 4 * hidden_size)
            hsb = _lstm_recurrence(xgb[::-1], w_hh_tb, hidden_size)[::-1]
            hs = jnp.concatenate([hs, hsb], axis=-1)

        # dropout between stacked LSTM layers (dropout_lstm): identity at inference.
        x = hs

    x = jnp.transpose(x, (1, 0, 2))                  # (B, T, out_units)
    x2d = x.reshape(b_sz * t_len, x.shape[-1])

    if w1 is not None:
        # dense + gelu + dropout (identity) + out_proj, fused in one kernel.
        out2d = _mlp_head(x2d, w1, b1, w2, b2, tm_max=tm_max,
                          matmul_dtype=matmul_dtype, out_dtype=features.dtype)
    else:
        # inner_dim == 0: out_proj only.
        out2d = _affine(x2d, w2, b2, tm_max=tm_max, matmul_dtype=matmul_dtype,
                        out_dtype=features.dtype)
    return out2d.reshape(b_sz, t_len, -1)


# ---------------------------------------------------------------------------
# pure-JAX reference
# ---------------------------------------------------------------------------

def _reference(features, lstm_params, hidden_size, w1, b1, w2, b2, *,
               bidirectional=False):
    b_sz = features.shape[0]
    x = jnp.transpose(features, (1, 0, 2)).astype(jnp.float32)

    def run_direction(seq, params):
        w_ih_t, w_hh_t, bias = params

        def step(carry, xt):
            h, c = carry
            gates = xt @ w_ih_t + h @ w_hh_t + bias
            i = jax.nn.sigmoid(gates[:, 0 * hidden_size:1 * hidden_size])
            f = jax.nn.sigmoid(gates[:, 1 * hidden_size:2 * hidden_size])
            g = jnp.tanh(gates[:, 2 * hidden_size:3 * hidden_size])
            o = jax.nn.sigmoid(gates[:, 3 * hidden_size:4 * hidden_size])
            c = f * c + i * g
            h = o * jnp.tanh(c)
            return (h, c), h

        h0 = jnp.zeros((b_sz, hidden_size), jnp.float32)
        c0 = jnp.zeros((b_sz, hidden_size), jnp.float32)
        _, hs = jax.lax.scan(step, (h0, c0), seq)
        return hs

    for fwd, bwd in lstm_params:
        hs = run_direction(x, fwd)
        if bidirectional:
            hs = jnp.concatenate([hs, run_direction(x[::-1], bwd)[::-1]], axis=-1)
        x = hs

    x = jnp.transpose(x, (1, 0, 2))
    if w1 is not None:
        x = jax.nn.gelu(x @ w1 + b1, approximate=False)
    y = x @ w2 + b2
    return y.astype(features.dtype)


# ---------------------------------------------------------------------------
# demo / self-test
# ---------------------------------------------------------------------------

if __name__ == "__main__":
    # Small config consistent with the module:
    #   input_dim=32, hidden_size=32 (4H = 128 = one full lane width),
    #   num_layers=2, bidirectional=False (dense expects hidden_size inputs),
    #   inner_dim=64, num_outs=16, activation_fn="gelu", dropouts inactive.
    B, T = 2, 8
    INPUT_DIM, HIDDEN, INNER, NUM_OUTS, NUM_LAYERS = 32, 32, 64, 16, 2
    BIDIRECTIONAL = False

    key = jax.random.PRNGKey(0)
    keys = jax.random.split(key, 2 * NUM_LAYERS + 5)

    features = jax.random.normal(keys[0], (B, T, INPUT_DIM), dtype=jnp.float32)

    def make_direction(k, d_in):
        k1, k2, k3 = jax.random.split(k, 3)
        w_ih_t = 0.2 * jax.random.normal(k1, (d_in, 4 * HIDDEN), jnp.float32)
        w_hh_t = 0.2 * jax.random.normal(k2, (HIDDEN, 4 * HIDDEN), jnp.float32)
        bias = 0.1 * jax.random.normal(k3, (4 * HIDDEN,), jnp.float32)  # b_ih+b_hh
        return w_ih_t, w_hh_t, bias

    out_units = HIDDEN * (2 if BIDIRECTIONAL else 1)
    lstm_params = []
    d_in = INPUT_DIM
    for layer in range(NUM_LAYERS):
        fwd = make_direction(keys[1 + 2 * layer], d_in)
        bwd = make_direction(keys[2 + 2 * layer], d_in) if BIDIRECTIONAL else None
        lstm_params.append((fwd, bwd))
        d_in = out_units

    w1 = 0.2 * jax.random.normal(keys[-4], (out_units, INNER), jnp.float32)
    b1 = 0.1 * jax.random.normal(keys[-3], (INNER,), jnp.float32)
    w2 = 0.2 * jax.random.normal(keys[-2], (INNER, NUM_OUTS), jnp.float32)
    b2 = 0.1 * jax.random.normal(keys[-1], (NUM_OUTS,), jnp.float32)

    out = wav2vec2_audioframe_class_lstm_head(
        features, None, lstm_params, HIDDEN, w1, b1, w2, b2,
        bidirectional=BIDIRECTIONAL)
    out = jax.block_until_ready(out)

    ref = _reference(features, lstm_params, HIDDEN, w1, b1, w2, b2,
                     bidirectional=BIDIRECTIONAL)
    assert out.shape == (B, T, NUM_OUTS), out.shape
    max_err = float(jnp.max(jnp.abs(out - ref)))
    assert jnp.allclose(out, ref, atol=1e-4, rtol=1e-4), max_err
    print("KERNEL_OK")
</pallas_src>

<mosaic_0001>
module attributes {stable_mosaic.version = 11 : i64} {
  func.func @_affine_kernel(%arg0: i32, %arg1: memref<16x32xf32, #tpu.memory_space<vmem>>, %arg2: memref<32x128xf32, #tpu.memory_space<vmem>>, %arg3: memref<1x128xf32, #tpu.memory_space<vmem>>, %arg4: memref<16x128xf32, #tpu.memory_space<vmem>>) attributes {dimension_semantics = [#tpu.dimension_semantics<parallel>], iteration_bounds = array<i64: 1>, scalar_prefetch = 0 : i64, scratch_operands = 0 : i64, tpu.core_type = #tpu.core_type<tc>, window_params = [{transform_indices = @transform_0, window_bounds = array<i64: 16, 32>}, {pipeline_mode = #tpu.pipeline_mode<synchronous>, transform_indices = @transform_1, window_bounds = array<i64: 32, 128>}, {pipeline_mode = #tpu.pipeline_mode<synchronous>, transform_indices = @transform_2, window_bounds = array<i64: 1, 128>}, {transform_indices = @transform_3, window_bounds = array<i64: 16, 128>}]} {
    %c0 = arith.constant 0 : index
    %c0_0 = arith.constant 0 : index
    %0 = vector.load %arg1[%c0, %c0_0] : memref<16x32xf32, #tpu.memory_space<vmem>>, vector<16x32xf32>
    %c0_1 = arith.constant 0 : index
    %c0_2 = arith.constant 0 : index
    %1 = vector.load %arg2[%c0_1, %c0_2] : memref<32x128xf32, #tpu.memory_space<vmem>>, vector<32x128xf32>
    %cst = arith.constant dense<0.000000e+00> : vector<16x128xf32>
    %2 = tpu.matmul %0, %1, %cst {dimension_numbers = #tpu.dot_dimension_numbers<[1], [0], [0], [1], [0, 0, 1, 1], [], []>} : vector<16x32xf32>, vector<32x128xf32>, vector<16x128xf32> -> vector<16x128xf32>
    %c0_3 = arith.constant 0 : index
    %c0_4 = arith.constant 0 : index
    %3 = vector.load %arg3[%c0_3, %c0_4] : memref<1x128xf32, #tpu.memory_space<vmem>>, vector<1x128xf32>
    %4 = vector.broadcast %3 : vector<1x128xf32> to vector<16x128xf32>
    %5 = arith.addf %2, %4 : vector<16x128xf32>
    %c0_5 = arith.constant 0 : index
    %c0_6 = arith.constant 0 : index
    %6 = vector.load %arg4[%c0_5, %c0_6] : memref<16x128xf32, #tpu.memory_space<vmem>>, vector<16x128xf32>
    tpu.vector_store %arg4[%c0_5, %c0_6], %5 {strides = array<i32>} : memref<16x128xf32, #tpu.memory_space<vmem>>, vector<16x128xf32>,
    return
  }
  func.func @transform_0(%arg0: i32) -> (i32, i32) {
    %c0_i32 = arith.constant 0 : i32
    %c0_i32_0 = arith.constant 0 : i32
    return %arg0, %c0_i32 : i32, i32
  }
  func.func @transform_1(%arg0: i32) -> (i32, i32) {
    %c0_i32 = arith.constant 0 : i32
    %c0_i32_0 = arith.constant 0 : i32
    %c0_i32_1 = arith.constant 0 : i32
    return %c0_i32, %c0_i32_0 : i32, i32
  }
  func.func @transform_2(%arg0: i32) -> (i32, i32) {
    %c0_i32 = arith.constant 0 : i32
    %c0_i32_0 = arith.constant 0 : i32
    %c0_i32_1 = arith.constant 0 : i32
    return %c0_i32, %c0_i32_0 : i32, i32
  }
  func.func @transform_3(%arg0: i32) -> (i32, i32) {
    %c0_i32 = arith.constant 0 : i32
    %c0_i32_0 = arith.constant 0 : i32
    return %arg0, %c0_i32 : i32, i32
  }
}

</mosaic_0001>

<bundles_post_ra>
// kernel: tpu_custom_call.1
= control target key start
LH: loop header
LB: loop body
LE: loop exit
PB: predicated region body
PF: predicated region fallthrough
CT: control target
= control target key end

     0   :  { %8 = vsyncpa [#allocation3], 0  ;;  %s245_s0 = inlined_call_operand.hbm [shape: f32[16,32], index: 0, kind: input, shape index: {}]   ;;  %s246_s1 = inlined_call_operand.hbm [shape: f32[32,128], index: 1, kind: input, shape index: {}]   ;;  %s247_s2 = inlined_call_operand.vmem [shape: f32[1,128], index: 2, kind: input, shape index: {}]   ;;  %s248_s3 = inlined_call_operand.hbm [shape: f32[16,128], index: 3, kind: output, shape index: {}]  }
   0x1   :  { %9 = vsyncpa [#allocation6], 0 }
   0x2   :  { %10 = vsyncpa [#allocation4], 0  ;;  %s15_s14 = sshll.u32 %s245_s0, 4  ;;  %s199_s15 = smov [#allocation2]   ;;  %s16_s14 = int_to_ptr.hbm [resolvable:$true] %s15_s14 }
   0x3   :  { %s17_s16 = sshll.u32 %s199_s15, 4  ;;  %s28_s19 = sshll.u32 %s246_s1, 4  ;;  %s18_s16 = int_to_ptr.vmem [resolvable:$true] %s17_s16  ;;  %s29_s19 = int_to_ptr.hbm [resolvable:$true] %s28_s19 }
   0x4   :  { %s200_s20 = smov 128   ;;  %s201_s21 = smov 8  }
   0x5   :  { %23 = dma.hbm_to_vmem [thread:$0]  %s16_s14, 256, %s18_s16, [#allocation3], %s200_s20, %s200_s20, %s201_s21  }
   0x6   :  { %s202_s22 = smov [#allocation5]  }
   0x7   :  { %s30_s23 = sshll.u32 %s202_s22, 4  ;;  %s31_s23 = int_to_ptr.vmem [resolvable:$true] %s30_s23 }
   0x8   :  { %36 = dma.hbm_to_vmem [thread:$0]  %s29_s19, 512, %s31_s23, [#allocation6], %s200_s20, %s200_s20, %s201_s21  }
   0x9   :  { %193 = dma.done.wait [#allocation3], 256  }
   0xa   :  { %194 = vsyncadd [#allocation3], 4294967040 }
   0xb   :  { %195 = dma.done.wait [#allocation6], 512  }
   0xc   :  { %196 = vsyncadd [#allocation6], 4294966784  ;;  %v52_v0 = vld [vmem:[#allocation5 + $0x18] sm:$0xff]  ;;  %v51_v1 = vld [vmem:[#allocation5 + $0x10] sm:$0xff]  ;;  %vm57_vm0 = vcmask 261120   ;;  %s203_s24 = smov [#allocation7]  }
   0xd   :  { %76 = vmatpush.msra.mxu0 %v52_v0  ;;  %111 = vmatpush.msra.mxu1 %v52_v0  ;;  %v50_v2 = vld [vmem:[#allocation5 + $0x8] sm:$0xff]  ;;  %v49_v3 = vld [vmem:[#allocation5] sm:$0xff]  ;;  %v47_v4 = vld [vmem:[#allocation2] sm:$0xff]  ;;  %s93_s25 = sshll.u32 %s203_s24, 4  ;;  %s95_s28 = sshll.u32 %s248_s3, 4  ;;  %s94_s25 = int_to_ptr.vmem [resolvable:$true] %s93_s25  ;;  %s96_s28 = int_to_ptr.hbm [resolvable:$true] %s95_s28 }
   0xe   :  { %v48_v5 = vld [vmem:[#allocation2 + $0x8] sm:$0xff]  ;;  %v120_v6 = vld [vmem:[%s247_s2] ss:$0 sm:$0xff] }
   0xf   :  { %77 = vmatpush.msra.mxu0 %v51_v1  ;;  %112 = vmatpush.msra.mxu1 %v51_v1 }
  0x11   :  { %78 = vmatpush.msra.mxu0 %v50_v2  ;;  %113 = vmatpush.msra.mxu1 %v50_v2 }
  0x13   :  { %79 = vmatpush.msra.mxu0 %v49_v3  ;;  %114 = vmatpush.msra.mxu1 %v49_v3 }
  0x14   :  { %109 = vmatmul.msk.f32.vlgmr.msra.gmra.mxu0 %vm57_vm0, %v47_v4  ;;  %110 = vmatmul.msk.f32.vlgmr.msra.gmra.mxu1 %vm57_vm0, %v48_v5 }
  0x91   :  { %v81_v7 = vpop.f32.mrf.mxu0  ;;  %v84_v8 = vpop.f32.mrf.mxu1 }
  0x92   :  { %v82_v9 = vadd.f32 %v120_v6, %v81_v7  ;;  %v85_v10 = vadd.f32 %v120_v6, %v84_v8 }
  0x94   :  { %87 = vst [vmem:[#allocation7] sm:$0xff] %v82_v9 }
  0x95   :  { %88 = vst [vmem:[#allocation7 + $0x8] sm:$0xff] %v85_v10 }
  0x96   :  { %101 = dma.vmem_to_hbm [thread:$0]  %s94_s25, 256, %s96_s28, [#allocation4], %s200_s20, %s200_s20, %s201_s21  }
  0x97   :  { %197 = dma.done.wait [#allocation4], 256  }
  0x98   :  { %198 = vsyncadd [#allocation4], 4294967040 }
  0x99   :  { %106 = vsyncpa [#allocation3], 1 }
  0x9a   :  { %107 = vsyncpa [#allocation6], 1 }
  0x9b   :  { %108 = vsyncpa [#allocation4], 1 }

</bundles_post_ra>
